<compile_context>
chip_gen: v7x
topology: tpu7x:2x2x1
jax: 0.10.0
libtpu: 0.0.40
codegen_flags: <defaults>
</compile_context>

<pallas_src>
import jax
import jax.numpy as jnp
from jax.experimental import pallas as pl
from jax.experimental.pallas import tpu as pltpu


# ---------------------------------------------------------------------------
# Kernels
# ---------------------------------------------------------------------------
def _fused_identity_kernel(x_ref, rf_ref, xo_ref, rfo_ref):
    # Pure pass-through of both tiny tensors in a single grid step.
    xo_ref[...] = x_ref[...]
    rfo_ref[...] = rf_ref[...]


def _copy_kernel(x_ref, o_ref):
    # Pure pass-through of one lane-dense tile.
    o_ref[...] = x_ref[...]


# ---------------------------------------------------------------------------
# Layout helpers
# ---------------------------------------------------------------------------
def _as_lane_dense_2d(x):
    """Flatten `x` to (rows, lanes) with `lanes` a multiple of 128.

    Prefers the largest lane width (up to 4096) that still gives >= 8 rows so
    the copy can be row-tiled in sublane multiples.  Totals not divisible by
    128 become a (1, total) slab which the tiled copy splits along the lane
    dimension (multiples of 128), so VMEM never has to hold the whole array.
    """
    total = int(x.size)
    flat = x.reshape((-1,))
    best = None
    for lanes in (4096, 2048, 1024, 512, 256, 128):
        if total % lanes != 0:
            continue
        if best is None:
            best = lanes
        if total // lanes >= 8:
            best = lanes
            break
    if best is not None:
        return flat.reshape((total // best, best))
    return flat.reshape((1, total))


def _padded_nbytes(arr2d):
    """VMEM footprint of one buffer holding `arr2d` (sublane/lane padding)."""
    rows, lanes = arr2d.shape
    prows = max(8, ((rows + 7) // 8) * 8)
    plan = ((lanes + 127) // 128) * 128
    return prows * plan * arr2d.dtype.itemsize


def _divisor_tile(extent, ideal, unit):
    """Largest multiple of `unit` <= `ideal` that divides `extent` (searched
    down to ideal/2); otherwise `ideal`, accepting one ragged final block."""
    ideal = max(unit, (ideal // unit) * unit)
    hi = min(ideal, ((extent + unit - 1) // unit) * unit)
    if extent % unit == 0:
        lo = max(unit, hi // 2)
        cand = hi
        while cand >= lo:
            if extent % cand == 0:
                return cand
            cand -= unit
    return hi


# ---------------------------------------------------------------------------
# Chip-aware sizing
# ---------------------------------------------------------------------------
# Combined *padded* footprint cap for the single-step fused path.  Above this,
# tiling (with its read/write DMA overlap and 2-TC splitting on v7x) wins; the
# only thing a single step saves is one launch, which matters only when tiny.
_FUSED_VMEM_BUDGET = 1 * 1024 * 1024
# Ensure copies above ~2 MiB get at least ~4 grid steps for pipeline overlap.
_MIN_PIPELINE_STEPS = 4
_MIN_TILE_BYTES = 512 * 1024


def _copy_params():
    """Return (vmem_limit_bytes, per-tile byte budget) derived from the chip.

    v7x (64 MiB VMEM)   -> 32 MiB limit, 8 MiB tiles (4 live buffers = 32 MiB)
    v6e/v5e (128 MiB)   -> 64 MiB limit, 16 MiB tiles
    Unknown / no query  -> v7x-safe defaults.
    """
    cap = 64 * 1024 * 1024
    try:
        info = pltpu.get_tpu_info()
        cap_attr = getattr(info, "vmem_capacity_bytes", None)
        if cap_attr:
            cap = int(cap_attr)
    except Exception:
        pass
    vmem_limit = min(cap // 2, 64 * 1024 * 1024)
    tile_bytes = vmem_limit // 4
    return vmem_limit, tile_bytes


# ---------------------------------------------------------------------------
# Pallas wrappers
# ---------------------------------------------------------------------------
def _pallas_fused_identity(x2d, rf2d):
    """One single-step pallas_call copying both tiny lane-dense slabs."""
    xr, xc = x2d.shape
    rr, rc = rf2d.shape
    return pl.pallas_call(
        _fused_identity_kernel,
        out_shape=(
            jax.ShapeDtypeStruct(x2d.shape, x2d.dtype),
            jax.ShapeDtypeStruct(rf2d.shape, rf2d.dtype),
        ),
        grid_spec=pltpu.PrefetchScalarGridSpec(
            num_scalar_prefetch=0,
            grid=(1,),
            in_specs=[
                pl.BlockSpec((xr, xc), lambda i: (0, 0)),
                pl.BlockSpec((rr, rc), lambda i: (0, 0)),
            ],
            out_specs=[
                pl.BlockSpec((xr, xc), lambda i: (0, 0)),
                pl.BlockSpec((rr, rc), lambda i: (0, 0)),
            ],
        ),
        compiler_params=pltpu.CompilerParams(
            # grid=(1,) => no pipelining and no cross-core split; only used
            # for tiny tensors.  Live footprint is ~2x the padded slab bytes
            # (no next-block prefetch), so 8 MiB covers the 1 MiB budget with
            # headroom and stays under v5e's 16 MiB scoped default.
            dimension_semantics=("arbitrary",),
            vmem_limit_bytes=8 * 1024 * 1024,
        ),
    )(x2d, rf2d)


def _pallas_tiled_identity(x2d, tile_bytes, vmem_limit_bytes):
    """Tiled lane-dense identity copy with pipelined, parallel grid steps."""
    rows, lanes = x2d.shape
    itemsize = x2d.dtype.itemsize
    nbytes = rows * lanes * itemsize
    # Shrink the tile (down to _MIN_TILE_BYTES) so medium copies still get a
    # few grid steps: read DMA of block i+1 overlaps write DMA of block i-1.
    tile_budget = max(1, min(tile_bytes,
                             max(nbytes // _MIN_PIPELINE_STEPS, _MIN_TILE_BYTES)))

    if rows >= 8 and lanes % 128 == 0:
        # Row tiling: sublane-aligned (multiple-of-8) row tiles, full lanes.
        bytes_per_row = lanes * itemsize
        ideal = max(8, ((tile_budget // bytes_per_row) // 8) * 8)
        ideal = min(ideal, (rows // 8) * 8)
        tile_rows = _divisor_tile(rows, ideal, 8)
        if tile_rows >= rows:
            block, index_map, grid = (rows, lanes), (lambda i: (0, 0)), (1,)
        else:
            block, index_map = (tile_rows, lanes), (lambda i: (i, 0))
            grid = (pl.cdiv(rows, tile_rows),)
    else:
        # Lane tiling (rows < 8, incl. odd totals flattened to (1, N)).  A
        # (<8, L) block pads sublanes to 8 in VMEM, so deflate the budget 8x.
        lane_budget = max(128 * itemsize, tile_budget // 8)
        bytes_per_col = rows * itemsize
        ideal = max(128, ((lane_budget // bytes_per_col) // 128) * 128)
        tile_lanes = _divisor_tile(lanes, ideal, 128)
        if tile_lanes >= lanes:
            block, index_map, grid = (rows, lanes), (lambda i: (0, 0)), (1,)
        else:
            block, index_map = (rows, tile_lanes), (lambda i: (0, i))
            grid = (pl.cdiv(lanes, tile_lanes),)

    return pl.pallas_call(
        _copy_kernel,
        out_shape=jax.ShapeDtypeStruct(x2d.shape, x2d.dtype),
        grid_spec=pltpu.PrefetchScalarGridSpec(
            num_scalar_prefetch=0,
            grid=grid,
            in_specs=[pl.BlockSpec(block, index_map)],
            out_specs=pl.BlockSpec(block, index_map),
        ),
        compiler_params=pltpu.CompilerParams(
            # "parallel" lets v7x split the copy across both TensorCores and
            # the raised limit keeps v5e's 16 MiB scoped default from silently
            # shrinking the blocks.
            dimension_semantics=("parallel",),
            vmem_limit_bytes=vmem_limit_bytes,
        ),
    )(x2d)


# ---------------------------------------------------------------------------
# Decoder forward
# ---------------------------------------------------------------------------
def decoder_forward(X, residue_features):
    """JAX equivalent of Decoder.forward(**kwargs).

    The PyTorch module is a pure pass-through with no parameters, so the
    optimal implementation performs zero data movement: outputs alias inputs,
    exactly as in PyTorch (the same X is returned twice).
    """
    return (X, X, residue_features, None)


def decoder_forward_materialized(X, residue_features):
    """Pass-through that materializes distinct output buffers via Pallas.

    Use only when fresh buffers are contractually required; otherwise prefer
    `decoder_forward` (no HBM traffic at all).
    """
    x2d = _as_lane_dense_2d(X)
    rf2d = _as_lane_dense_2d(residue_features)
    vmem_limit, tile_bytes = _copy_params()

    if _padded_nbytes(x2d) + _padded_nbytes(rf2d) <= _FUSED_VMEM_BUDGET:
        # Tiny: one fused launch; pipeline overlap would not pay for itself.
        xo2d, rfo2d = _pallas_fused_identity(x2d, rf2d)
    else:
        # TODO(synk): fuse both tensors into a single tiled pallas_call sharing
        # one grid (saves a launch + pipeline ramp); skipped because mismatched
        # row counts would need clamped/ragged index maps.
        xo2d = _pallas_tiled_identity(x2d, tile_bytes, vmem_limit)
        rfo2d = _pallas_tiled_identity(rf2d, tile_bytes, vmem_limit)

    x_out = xo2d.reshape(X.shape)
    rf_out = rfo2d.reshape(residue_features.shape)
    # Matches PyTorch semantics: the same X tensor object is returned for the
    # first two outputs.
    return (x_out, x_out, rf_out, None)


if __name__ == "__main__":
    key = jax.random.PRNGKey(0)
    k1, k2, k3, k4 = jax.random.split(key, 4)

    # Small shapes consistent with a decoder pass-through:
    #   X: (batch=2, seq=8, hidden=32)
    #   residue_features: (batch=2, residues=16, hidden=32)
    X = jax.random.normal(k1, (2, 8, 32), dtype=jnp.float32)
    residue_features = jax.random.normal(k2, (2, 16, 32), dtype=jnp.float32)

    # Default (optimized) path: pure pass-through, zero copies.
    out = decoder_forward(X, residue_features)
    assert out[3] is None
    assert out[0] is X and out[1] is X and out[2] is residue_features

    # Pallas path: tiny tensors take the fused single-launch identity copy.
    mat = decoder_forward_materialized(X, residue_features)
    jax.block_until_ready((mat[0], mat[2]))
    assert mat[3] is None
    assert jnp.array_equal(mat[0], X)
    assert jnp.array_equal(mat[1], X)
    assert jnp.array_equal(mat[2], residue_features)
    assert mat[0].shape == X.shape and mat[0].dtype == X.dtype
    assert mat[2].shape == residue_features.shape
    assert mat[2].dtype == residue_features.dtype

    # Exercise the pipelined row-tiled path with a forced small tile so the
    # grid has multiple (parallel) steps.
    med = jax.random.normal(k3, (4, 64, 512), dtype=jnp.float32)  # 512 KiB
    med2d = _as_lane_dense_2d(med)
    med_copy = _pallas_tiled_identity(med2d, tile_bytes=64 * 1024,
                                      vmem_limit_bytes=8 * 1024 * 1024)
    jax.block_until_ready(med_copy)
    assert jnp.array_equal(med_copy.reshape(med.shape), med)

    # Exercise the lane-tiled fallback for totals not divisible by 128
    # (ragged final block, bounded VMEM).
    odd = jax.random.normal(k4, (1000,), dtype=jnp.float32)
    odd2d = _as_lane_dense_2d(odd)
    odd_copy = _pallas_tiled_identity(odd2d, tile_bytes=8 * 1024,
                                      vmem_limit_bytes=8 * 1024 * 1024)
    jax.block_until_ready(odd_copy)
    assert jnp.array_equal(odd_copy.reshape(odd.shape), odd)

    # Also run the chip-tuned tiled path end to end on the tiny inputs.
    vmem_limit, tile_bytes = _copy_params()
    x_tiled = _pallas_tiled_identity(_as_lane_dense_2d(X), tile_bytes, vmem_limit)
    jax.block_until_ready(x_tiled)
    assert jnp.array_equal(x_tiled.reshape(X.shape), X)

    print("KERNEL_OK")
</pallas_src>

<mosaic_0001>
module attributes {stable_mosaic.version = 11 : i64} {
  func.func @_fused_identity_kernel(%arg0: i32, %arg1: memref<1x512xf32, #tpu.memory_space<vmem>>, %arg2: memref<8x128xf32, #tpu.memory_space<vmem>>, %arg3: memref<1x512xf32, #tpu.memory_space<vmem>>, %arg4: memref<8x128xf32, #tpu.memory_space<vmem>>) attributes {dimension_semantics = [#tpu.dimension_semantics<arbitrary>], iteration_bounds = array<i64: 1>, scalar_prefetch = 0 : i64, scratch_operands = 0 : i64, tpu.core_type = #tpu.core_type<tc>, window_params = [{pipeline_mode = #tpu.pipeline_mode<synchronous>, transform_indices = @transform_0, window_bounds = array<i64: 1, 512>}, {pipeline_mode = #tpu.pipeline_mode<synchronous>, transform_indices = @transform_1, window_bounds = array<i64: 8, 128>}, {pipeline_mode = #tpu.pipeline_mode<synchronous>, transform_indices = @transform_2, window_bounds = array<i64: 1, 512>}, {pipeline_mode = #tpu.pipeline_mode<synchronous>, transform_indices = @transform_3, window_bounds = array<i64: 8, 128>}]} {
    %c0 = arith.constant 0 : index
    %c0_0 = arith.constant 0 : index
    %0 = vector.load %arg1[%c0, %c0_0] : memref<1x512xf32, #tpu.memory_space<vmem>>, vector<1x512xf32>
    %c0_1 = arith.constant 0 : index
    %c0_2 = arith.constant 0 : index
    %1 = vector.load %arg3[%c0_1, %c0_2] : memref<1x512xf32, #tpu.memory_space<vmem>>, vector<1x512xf32>
    tpu.vector_store %arg3[%c0_1, %c0_2], %0 {strides = array<i32>} : memref<1x512xf32, #tpu.memory_space<vmem>>, vector<1x512xf32>,
    %c0_3 = arith.constant 0 : index
    %c0_4 = arith.constant 0 : index
    %2 = vector.load %arg2[%c0_3, %c0_4] : memref<8x128xf32, #tpu.memory_space<vmem>>, vector<8x128xf32>
    %c0_5 = arith.constant 0 : index
    %c0_6 = arith.constant 0 : index
    %3 = vector.load %arg4[%c0_5, %c0_6] : memref<8x128xf32, #tpu.memory_space<vmem>>, vector<8x128xf32>
    tpu.vector_store %arg4[%c0_5, %c0_6], %2 {strides = array<i32>} : memref<8x128xf32, #tpu.memory_space<vmem>>, vector<8x128xf32>,
    return
  }
  func.func @transform_0(%arg0: i32) -> (i32, i32) {
    %c0_i32 = arith.constant 0 : i32
    %c0_i32_0 = arith.constant 0 : i32
    %c0_i32_1 = arith.constant 0 : i32
    return %c0_i32, %c0_i32_0 : i32, i32
  }
  func.func @transform_1(%arg0: i32) -> (i32, i32) {
    %c0_i32 = arith.constant 0 : i32
    %c0_i32_0 = arith.constant 0 : i32
    %c0_i32_1 = arith.constant 0 : i32
    return %c0_i32, %c0_i32_0 : i32, i32
  }
  func.func @transform_2(%arg0: i32) -> (i32, i32) {
    %c0_i32 = arith.constant 0 : i32
    %c0_i32_0 = arith.constant 0 : i32
    %c0_i32_1 = arith.constant 0 : i32
    return %c0_i32, %c0_i32_0 : i32, i32
  }
  func.func @transform_3(%arg0: i32) -> (i32, i32) {
    %c0_i32 = arith.constant 0 : i32
    %c0_i32_0 = arith.constant 0 : i32
    %c0_i32_1 = arith.constant 0 : i32
    return %c0_i32, %c0_i32_0 : i32, i32
  }
}

</mosaic_0001>

<bundles_post_ra>
// kernel: tpu_custom_call.1
= control target key start
LH: loop header
LB: loop body
LE: loop exit
PB: predicated region body
PF: predicated region fallthrough
CT: control target
= control target key end

     0   :  { %9 = vsyncpa [#allocation3], 0  ;;  %s249_s0 = inlined_call_operand.hbm [shape: f32[1,512], index: 0, kind: input, shape index: {}]   ;;  %s250_s1 = inlined_call_operand.hbm [shape: f32[8,128], index: 1, kind: input, shape index: {}]   ;;  %s251_s2 = inlined_call_operand.hbm [shape: f32[1,512], index: 2, kind: output, shape index: {0}]   ;;  %s252_s3 = inlined_call_operand.hbm [shape: f32[8,128], index: 3, kind: output, shape index: {1}]  }
   0x1   :  { %10 = vsyncpa [#allocation6], 0 }
   0x2   :  { %11 = vsyncpa [#allocation4], 0 }
   0x3   :  { %12 = vsyncpa [#allocation9], 0  ;;  %s177_s12 = smov [#allocation2]   ;;  %s178_s14 = smov [#allocation5]  }
   0x4   :  { %s19_s13 = sshll.u32 %s177_s12, 4  ;;  %s29_s15 = sshll.u32 %s178_s14, 4  ;;  %s20_s13 = int_to_ptr.vmem [resolvable:$true] %s19_s13  ;;  %s30_s15 = int_to_ptr.vmem [resolvable:$true] %s29_s15 }
   0x5   :  { %s81_s18 = scalar_lea.hbm %s249_s0, 64 }
   0x6   :  { %p82_p0 = scmp.ne.s32.totalorder %s249_s0, %s81_s18  ;;  %p85_p1 = scmp.lt.u32.totalorder %s81_s18, %s249_s0 }
   0x8   :  { %p87_p2 = pnand %p85_p1, %p82_p0 }
   0xa   :  { %90 = shalt.err (!%p87_p2)
}
   0xb   :  { %s91_s23 = scalar_lea.vmem %s20_s13, 64  ;;  %p96_p4 = scmp.lt.s32.totalorder %s20_s13, %s20_s13 }
   0xc   :  { %p92_p3 = scmp.ne.s32.totalorder %s20_s13, %s91_s23  ;;  %p97_p5 = scmp.lt.s32.totalorder %s91_s23, %s91_s23 }
   0xe   :  { %p98_p6 = por %p97_p5, %p96_p4 }
  0x10   :  { %p99_p7 = pnand %p98_p6, %p92_p3 }
  0x12   :  { %102 = shalt.err (!%p99_p7)
}
  0x13   :  { %22 = dma.hbm_to_vmem [thread:$0]  %s249_s0, 64, %s20_s13, [#allocation3]  }
  0x14   :  { %s103_s28 = scalar_lea.hbm %s250_s1, 128 }
  0x15   :  { %p104_p8 = scmp.ne.s32.totalorder %s250_s1, %s103_s28  ;;  %p107_p9 = scmp.lt.u32.totalorder %s103_s28, %s250_s1 }
  0x17   :  { %p109_p10 = pnand %p107_p9, %p104_p8 }
  0x19   :  { %112 = shalt.err (!%p109_p10)
}
  0x1a   :  { %s113_s6 = scalar_lea.vmem %s30_s15, 128  ;;  %p118_p12 = scmp.lt.s32.totalorder %s30_s15, %s30_s15 }
  0x1b   :  { %p114_p11 = scmp.ne.s32.totalorder %s30_s15, %s113_s6  ;;  %p119_p13 = scmp.lt.s32.totalorder %s113_s6, %s113_s6 }
  0x1d   :  { %p120_p0 = por %p119_p13, %p118_p12 }
  0x1f   :  { %p121_p1 = pnand %p120_p0, %p114_p11 }
  0x21   :  { %124 = shalt.err (!%p121_p1)
}
  0x22   :  { %32 = dma.hbm_to_vmem [thread:$0]  %s250_s1, 128, %s30_s15, [#allocation6]  }
  0x23   :  { %169 = dma.done.wait [#allocation3], 64  }
  0x24   :  { %170 = vsyncadd [#allocation3], 4294967232 }
  0x25   :  { %171 = dma.done.wait [#allocation6], 128  }
  0x26   :  { %172 = vsyncadd [#allocation6], 4294967168  ;;  %v40_v0 = vlaneseq  ;;  %s179_s8 = smov [#allocation7]   ;;  %s180_s10 = smov [#allocation8]   ;;  %v39_v1 = vld [vmem:[#allocation2] sm:$0xf] }
  0x27   :  { %s53_s9 = sshll.u32 %s179_s8, 4  ;;  %s63_s11 = sshll.u32 %s180_s10, 4  ;;  %v45_v2 = vld [vmem:[#allocation5] sm:$0xff]  ;;  %s54_s9 = int_to_ptr.vmem [resolvable:$true] %s53_s9  ;;  %s64_s11 = int_to_ptr.vmem [resolvable:$true] %s63_s11 }
  0x28   :  { %vm42_vm0 = vcmp.lt.s32.totalorder %v40_v0, 512  ;;  %46 = vst [vmem:[#allocation8] sm:$0xff] %v45_v2  ;;  %s125_s12 = scalar_lea.vmem %s54_s9, 64  ;;  %p130_p3 = scmp.lt.s32.totalorder %s54_s9, %s54_s9 }
  0x29   :  { %44 = vst.msk [vmem:[#allocation7] sm:$0xf] %vm42_vm0, %v39_v1  ;;  %p126_p2 = scmp.ne.s32.totalorder %s54_s9, %s125_s12  ;;  %p131_p4 = scmp.lt.s32.totalorder %s125_s12, %s125_s12 }
  0x2b   :  { %p132_p5 = por %p131_p4, %p130_p3 }
  0x2d   :  { %p133_p6 = pnand %p132_p5, %p126_p2 }
  0x2f   :  { %136 = shalt.err (!%p133_p6)
}
  0x30   :  { %s137_s14 = scalar_lea.hbm %s251_s2, 64 }
  0x31   :  { %p138_p7 = scmp.ne.s32.totalorder %s251_s2, %s137_s14  ;;  %p141_p8 = scmp.lt.u32.totalorder %s137_s14, %s251_s2 }
  0x33   :  { %p143_p9 = pnand %p141_p8, %p138_p7 }
  0x35   :  { %146 = shalt.err (!%p143_p9)
}
  0x36   :  { %56 = dma.vmem_to_hbm [thread:$0]  %s54_s9, 64, %s251_s2, [#allocation4]  }
  0x37   :  { %s147_s21 = scalar_lea.vmem %s64_s11, 128  ;;  %p152_p11 = scmp.lt.s32.totalorder %s64_s11, %s64_s11 }
  0x38   :  { %p148_p10 = scmp.ne.s32.totalorder %s64_s11, %s147_s21  ;;  %p153_p12 = scmp.lt.s32.totalorder %s147_s21, %s147_s21 }
  0x3a   :  { %p154_p13 = por %p153_p12, %p152_p11 }
  0x3c   :  { %p155_p0 = pnand %p154_p13, %p148_p10 }
  0x3e   :  { %158 = shalt.err (!%p155_p0)
}
  0x3f   :  { %s159_s24 = scalar_lea.hbm %s252_s3, 128 }
  0x40   :  { %p160_p1 = scmp.ne.s32.totalorder %s252_s3, %s159_s24  ;;  %p163_p2 = scmp.lt.u32.totalorder %s159_s24, %s252_s3 }
  0x42   :  { %p165_p3 = pnand %p163_p2, %p160_p1 }
  0x44   :  { %168 = shalt.err (!%p165_p3)
}
  0x45   :  { %66 = dma.vmem_to_hbm [thread:$0]  %s64_s11, 128, %s252_s3, [#allocation9]  }
  0x46   :  { %173 = dma.done.wait [#allocation4], 64  }
  0x47   :  { %174 = vsyncadd [#allocation4], 4294967232 }
  0x48   :  { %175 = dma.done.wait [#allocation9], 128  }
  0x49   :  { %176 = vsyncadd [#allocation9], 4294967168 }
  0x4a   :  { %73 = vsyncpa [#allocation3], 1 }
  0x4b   :  { %74 = vsyncpa [#allocation6], 1 }
  0x4c   :  { %75 = vsyncpa [#allocation4], 1 }
  0x4d   :  { %76 = vsyncpa [#allocation9], 1 }

</bundles_post_ra>
